<compile_context>
chip_gen: v6e
topology: v6e:2x2x1
jax: 0.10.0
libtpu: 0.0.40
codegen_flags: <defaults>
</compile_context>

<pallas_src>
import math

import jax
import jax.numpy as jnp
from jax.experimental import pallas as pl
from jax.experimental.pallas import tpu as pltpu

_LANE = 128            # lane width of a vreg
_SUBLANE = 8           # sublane count -> min row granularity
_MAX_TILE_ROWS = 1024  # (1024, 128) f32 tile = 512 KiB per buffer


def _logistic_kernel(scal_ref, y_ref, f_ref, jac_ref):
    # scal_ref: SMEM (2,)  -> [r, r/K]   (scalar-prefetched)
    # y_ref   : VMEM (tile_rows, 128)
    # f_ref   : VMEM (tile_rows, 128)
    # jac_ref : VMEM (tile_rows, 128)
    r = scal_ref[0]
    r_over_k = scal_ref[1]
    y = y_ref[...]
    ry_over_k = y * r_over_k                 # r*y/K
    f_ref[...] = (r - ry_over_k) * y         # r*(1 - y/K)*y
    jac_ref[...] = r - (ry_over_k + ry_over_k)  # r - 2*r*y/K


def logistic_ode_forward(t, y, r, K, *, min_pallas_elems=1024):
    """Pallas implementation of LogisticODE(r, K).forward(t, y).

    t is accepted for API parity but (as in the PyTorch module) unused.
    Returns (f, jac) with f.shape == y.shape and jac.shape == y.shape + (1,).
    """
    del t  # unused in the forward computation

    y = jnp.asarray(y, jnp.float32)
    orig_shape = y.shape
    n = math.prod(orig_shape) if orig_shape else 1
    r32 = jnp.float32(r)
    k32 = jnp.float32(K)

    # Tiny-N fast path: pallas_call launch + DMA setup dominates a handful of
    # elements; let XLA fuse the two elementwise expressions instead.
    if n < min_pallas_elems:
        f = r32 * (1.0 - y / k32) * y
        jac = (r32 - 2.0 * r32 * y / k32)[..., None]
        return f, jac

    # --- lane-dense 2D slab: (rows, 128), rows a multiple of 8 -------------
    rows = -(-n // _LANE)
    rows = -(-rows // _SUBLANE) * _SUBLANE
    if rows > _MAX_TILE_ROWS:
        tile_rows = _MAX_TILE_ROWS
        rows = -(-rows // tile_rows) * tile_rows   # pad to a whole number of tiles
    else:
        tile_rows = rows                           # single full-array block
    grid = rows // tile_rows
    n_pad = rows * _LANE

    y_flat = jnp.pad(y.reshape(-1), (0, n_pad - n))
    y2d = y_flat.reshape(rows, _LANE)

    # Hoisted scalars: [r, r/K] -> SMEM via scalar prefetch.
    scal = jnp.stack([r32, r32 / k32]).astype(jnp.float32)

    blk = lambda i, scal_ref: (i, 0)
    f2d, j2d = pl.pallas_call(
        _logistic_kernel,
        out_shape=(
            jax.ShapeDtypeStruct((rows, _LANE), jnp.float32),
            jax.ShapeDtypeStruct((rows, _LANE), jnp.float32),
        ),
        grid_spec=pltpu.PrefetchScalarGridSpec(
            num_scalar_prefetch=1,
            grid=(grid,),
            in_specs=[pl.BlockSpec((tile_rows, _LANE), blk)],
            out_specs=(
                pl.BlockSpec((tile_rows, _LANE), blk),
                pl.BlockSpec((tile_rows, _LANE), blk),
            ),
        ),
        compiler_params=pltpu.CompilerParams(
            dimension_semantics=("parallel",)),
    )(scal, y2d)

    # Free XLA metadata ops: drop padding and restore module shapes.
    f = f2d.reshape(-1)[:n].reshape(orig_shape)
    jac = j2d.reshape(-1)[:n].reshape(orig_shape + (1,))
    return f, jac


if __name__ == "__main__":
    r_val, K_val = 0.5, 2.0
    t = jnp.float32(0.3)  # unused by forward, passed for parity

    def reference(y):
        f = r_val * (1.0 - y / K_val) * y
        jac = (r_val - 2.0 * r_val * y / K_val)[..., None]
        return f, jac

    key = jax.random.PRNGKey(0)
    k_small, k_large = jax.random.split(key)

    # Case 1: module-shaped tiny batch (nbatch, 1); force the Pallas path
    # (single full-array block, lane-dense slab).
    nbatch = 8
    y_small = jax.random.uniform(k_small, (nbatch, 1), dtype=jnp.float32) * K_val
    f, jac = logistic_ode_forward(t, y_small, r_val, K_val, min_pallas_elems=0)
    f, jac = jax.block_until_ready((f, jac))
    f_ref, jac_ref = reference(y_small)
    assert f.shape == (nbatch, 1) and jac.shape == (nbatch, 1, 1)
    assert jnp.allclose(f, f_ref, atol=1e-6, rtol=1e-6)
    assert jnp.allclose(jac, jac_ref, atol=1e-6, rtol=1e-6)

    # Case 2: larger batch exercising the tiled, double-buffered grid path
    # (rows=2048 -> two (1024, 128) tiles, "parallel" grid axis).
    nbatch2 = 2 * _MAX_TILE_ROWS * _LANE  # 262144 elements (~1 MiB f32)
    y_large = jax.random.uniform(k_large, (nbatch2, 1), dtype=jnp.float32) * K_val
    f2, jac2 = logistic_ode_forward(t, y_large, r_val, K_val)
    f2, jac2 = jax.block_until_ready((f2, jac2))
    f2_ref, jac2_ref = reference(y_large)
    assert f2.shape == (nbatch2, 1) and jac2.shape == (nbatch2, 1, 1)
    assert jnp.allclose(f2, f2_ref, atol=1e-6, rtol=1e-6)
    assert jnp.allclose(jac2, jac2_ref, atol=1e-6, rtol=1e-6)

    print("KERNEL_OK")
</pallas_src>

<mosaic_0001>
module attributes {stable_mosaic.version = 11 : i64} {
  func.func @_logistic_kernel(%arg0: i32, %arg1: memref<2xf32, #tpu.memory_space<smem>>, %arg2: memref<8x128xf32, #tpu.memory_space<vmem>>, %arg3: memref<8x128xf32, #tpu.memory_space<vmem>>, %arg4: memref<8x128xf32, #tpu.memory_space<vmem>>) attributes {dimension_semantics = [#tpu.dimension_semantics<parallel>], iteration_bounds = array<i64: 1>, scalar_prefetch = 1 : i64, scratch_operands = 0 : i64, tpu.core_type = #tpu.core_type<tc>, window_params = [{transform_indices = @transform_0, window_bounds = array<i64: 8, 128>}, {transform_indices = @transform_1, window_bounds = array<i64: 8, 128>}, {transform_indices = @transform_2, window_bounds = array<i64: 8, 128>}]} {
    %c0 = arith.constant 0 : index
    %0 = memref.load %arg1[%c0] : memref<2xf32, #tpu.memory_space<smem>>
    %c1 = arith.constant 1 : index
    %1 = memref.load %arg1[%c1] : memref<2xf32, #tpu.memory_space<smem>>
    %c0_0 = arith.constant 0 : index
    %c0_1 = arith.constant 0 : index
    %2 = vector.load %arg2[%c0_0, %c0_1] : memref<8x128xf32, #tpu.memory_space<vmem>>, vector<8x128xf32>
    %3 = vector.broadcast %1 : f32 to vector<8x128xf32>
    %4 = arith.mulf %2, %3 : vector<8x128xf32>
    %5 = vector.broadcast %0 : f32 to vector<8x128xf32>
    %6 = arith.subf %5, %4 : vector<8x128xf32>
    %7 = arith.mulf %6, %2 : vector<8x128xf32>
    %c0_2 = arith.constant 0 : index
    %c0_3 = arith.constant 0 : index
    %8 = vector.load %arg3[%c0_2, %c0_3] : memref<8x128xf32, #tpu.memory_space<vmem>>, vector<8x128xf32>
    tpu.vector_store %arg3[%c0_2, %c0_3], %7 {strides = array<i32>} : memref<8x128xf32, #tpu.memory_space<vmem>>, vector<8x128xf32>,
    %9 = arith.addf %4, %4 : vector<8x128xf32>
    %10 = vector.broadcast %0 : f32 to vector<8x128xf32>
    %11 = arith.subf %10, %9 : vector<8x128xf32>
    %c0_4 = arith.constant 0 : index
    %c0_5 = arith.constant 0 : index
    %12 = vector.load %arg4[%c0_4, %c0_5] : memref<8x128xf32, #tpu.memory_space<vmem>>, vector<8x128xf32>
    tpu.vector_store %arg4[%c0_4, %c0_5], %11 {strides = array<i32>} : memref<8x128xf32, #tpu.memory_space<vmem>>, vector<8x128xf32>,
    return
  }
  func.func @transform_0(%arg0: i32, %arg1: memref<2xf32, #tpu.memory_space<smem>>) -> (i32, i32) {
    %c0_i32 = arith.constant 0 : i32
    %c0_i32_0 = arith.constant 0 : i32
    return %arg0, %c0_i32 : i32, i32
  }
  func.func @transform_1(%arg0: i32, %arg1: memref<2xf32, #tpu.memory_space<smem>>) -> (i32, i32) {
    %c0_i32 = arith.constant 0 : i32
    %c0_i32_0 = arith.constant 0 : i32
    return %arg0, %c0_i32 : i32, i32
  }
  func.func @transform_2(%arg0: i32, %arg1: memref<2xf32, #tpu.memory_space<smem>>) -> (i32, i32) {
    %c0_i32 = arith.constant 0 : i32
    %c0_i32_0 = arith.constant 0 : i32
    return %arg0, %c0_i32 : i32, i32
  }
}

</mosaic_0001>

<bundles_post_ra>
// kernel: tpu_custom_call.1
= control target key start
LH: loop header
LB: loop body
LE: loop exit
PB: predicated region body
PF: predicated region fallthrough
CT: control target
= control target key end

     0   :  { %s151_s12 = smov [#allocation3]   ;;  %s187_s0 = inlined_call_operand.hbm [shape: f32[2], index: 0, kind: input, shape index: {}]   ;;  %s188_s1 = inlined_call_operand.hbm [shape: f32[8,128], index: 1, kind: input, shape index: {}]   ;;  %s189_s2 = inlined_call_operand.hbm [shape: f32[8,128], index: 2, kind: output, shape index: {0}]   ;;  %s190_s3 = inlined_call_operand.hbm [shape: f32[8,128], index: 3, kind: output, shape index: {1}]  }
   0x1   :  { %10 = dma.hbm_to_smem %s187_s0, 16, %s151_s12, [#allocation2] }
   0x2   :  { %143 = dma.done.wait [#allocation2], 16 }
   0x3   :  { %144 = vsyncadd [#allocation2], 4294967280 }
   0x4   :  { %12 = sfence }
   0x5   :  { %13 = vsyncpa [#allocation5], 0 }
   0x6   :  { %14 = vsyncpa [#allocation6], 0 }
   0x7   :  { %15 = vsyncpa [#allocation9], 0  ;;  %s152_s15 = smov [#allocation4]  }
   0x8   :  { %s22_s16 = sshll.u32 %s152_s15, 4  ;;  %s23_s16 = int_to_ptr.vmem [resolvable:$true] %s22_s16 }
   0x9   :  { %s91_s17 = scalar_lea.vmem %s23_s16, 128  ;;  %p96_p1 = scmp.lt.s32.totalorder %s23_s16, %s23_s16 }
   0xa   :  { %p92_p0 = scmp.ne.s32.totalorder %s23_s16, %s91_s17  ;;  %p97_p2 = scmp.lt.s32.totalorder %s91_s17, %s91_s17 }
   0xc   :  { %p98_p3 = por %p97_p2, %p96_p1 }
   0xe   :  { %p99_p4 = pnand %p98_p3, %p92_p0 }
  0x10   :  { %102 = shalt.err (!%p99_p4)
}
  0x11   :  { %25 = dma.hbm_to_vmem [thread:$0]  %s188_s1, 128, %s23_s16, [#allocation5]  }
  0x12   :  { %145 = dma.done.wait [#allocation5], 128  }
  0x13   :  { %146 = vsyncadd [#allocation5], 4294967168  ;;  %s29_s0 = sld [smem:[#allocation3]]  ;;  %v31_v0 = vld [vmem:[#allocation4] sm:$0xff]  ;;  %s153_s21 = smov [#allocation7]  }
  0x14   :  { %s70_s20 = sld [smem:[#allocation3 + $0x1]]  ;;  %s47_s22 = sshll.u32 %s153_s21, 4  ;;  %s48_s22 = int_to_ptr.vmem [resolvable:$true] %s47_s22 }
  0x15   :  { %s154_s23 = smov [#allocation8]   ;;  %s103_s1 = scalar_lea.vmem %s48_s22, 128 }
  0x16   :  { %s57_s24 = sshll.u32 %s154_s23, 4  ;;  %p104_p5 = scmp.ne.s32.totalorder %s48_s22, %s103_s1  ;;  %s58_s24 = int_to_ptr.vmem [resolvable:$true] %s57_s24 }
  0x17   :  { %p108_p6 = scmp.lt.s32.totalorder %s48_s22, %s48_s22  ;;  %p109_p7 = scmp.lt.s32.totalorder %s103_s1, %s103_s1 }
  0x19   :  { %v34_v2 = vstv %s29_s0  ;;  %p110_p8 = por %p109_p7, %p108_p6 }
  0x1a   :  { %v32_v1 = vstv %s70_s20 }
  0x1b   :  { %v33_v3 = vmul.f32 %v32_v1, %v31_v0  ;;  %p111_p9 = pnand %p110_p8, %p104_p5 }
  0x1d   :  { %v35_v4 = vsub.f32 %v34_v2, %v33_v3  ;;  %v38_v5 = vadd.f32 %v33_v3, %v33_v3 }
  0x1f   :  { %v36_v6 = vmul.f32 %v35_v4, %v31_v0  ;;  %v39_v7 = vsub.f32 %v34_v2, %v38_v5 }
  0x21   :  { %37 = vst [vmem:[#allocation7] sm:$0xff] %v36_v6  ;;  %40 = vst [vmem:[#allocation8] sm:$0xff] %v39_v7 }
  0x22   :  { %114 = shalt.err (!%p111_p9)
}
  0x23   :  { %50 = dma.vmem_to_hbm [thread:$0]  %s48_s22, 128, %s189_s2, [#allocation6]  }
  0x24   :  { %s123_s27 = scalar_lea.vmem %s58_s24, 128  ;;  %p128_p11 = scmp.lt.s32.totalorder %s58_s24, %s58_s24 }
  0x25   :  { %p124_p10 = scmp.ne.s32.totalorder %s58_s24, %s123_s27  ;;  %p129_p12 = scmp.lt.s32.totalorder %s123_s27, %s123_s27 }
  0x27   :  { %p130_p13 = por %p129_p12, %p128_p11 }
  0x29   :  { %p131_p0 = pnand %p130_p13, %p124_p10 }
  0x2b   :  { %134 = shalt.err (!%p131_p0)
}
  0x2c   :  { %60 = dma.vmem_to_hbm [thread:$0]  %s58_s24, 128, %s190_s3, [#allocation9]  }
  0x2d   :  { %147 = dma.done.wait [#allocation6], 128  }
  0x2e   :  { %148 = vsyncadd [#allocation6], 4294967168 }
  0x2f   :  { %149 = dma.done.wait [#allocation9], 128  }
  0x30   :  { %150 = vsyncadd [#allocation9], 4294967168 }
  0x31   :  { %67 = vsyncpa [#allocation5], 1 }
  0x32   :  { %68 = vsyncpa [#allocation6], 1 }
  0x33   :  { %69 = vsyncpa [#allocation9], 1 }

</bundles_post_ra>
